<compile_context>
chip_gen: v5e
topology: v5e:2x2
jax: 0.10.0
libtpu: 0.0.40
codegen_flags: <defaults>
</compile_context>

<pallas_src>
import functools

import jax
import jax.numpy as jnp
from jax.experimental import pallas as pl
from jax.experimental.pallas import tpu as pltpu


# ---------------------------------------------------------------------------
# Kernels
# ---------------------------------------------------------------------------

def _swiglu_block(x_ref, wgu_ref, wd_ref, compute_dtype):
    """One (tm, ti) slab of the fused SwiGLU: silu(x@Wg) * (x@Wu) @ Wd."""
    x = x_ref[...].astype(compute_dtype)                 # in-kernel cast (no HBM pass)
    g = jnp.dot(x, wgu_ref[0], preferred_element_type=jnp.float32)   # (tm, ti) f32
    u = jnp.dot(x, wgu_ref[1], preferred_element_type=jnp.float32)   # (tm, ti) f32
    h = (g * jax.nn.sigmoid(g)) * u                                   # SiLU(g) * u, f32
    return jnp.dot(h.astype(compute_dtype), wd_ref[...],
                   preferred_element_type=jnp.float32)                # (tm, H)  f32


def _mlp_kernel_f32out(x_ref, wgu_ref, wd_ref, o_ref, *, compute_dtype):
    # f32 output: accumulate directly into the resident output block (its index_map
    # only depends on i, so it stays in VMEM across the j reduction loop).
    j = pl.program_id(1)

    @pl.when(j == 0)
    def _():
        o_ref[...] = jnp.zeros_like(o_ref)

    o_ref[...] += _swiglu_block(x_ref, wgu_ref, wd_ref, compute_dtype)


def _mlp_kernel_acc(x_ref, wgu_ref, wd_ref, o_ref, acc_ref, *, compute_dtype):
    # Non-f32 output (e.g. bf16): accumulate in an f32 VMEM scratch, cast once.
    j = pl.program_id(1)

    @pl.when(j == 0)
    def _():
        acc_ref[...] = jnp.zeros_like(acc_ref)

    acc_ref[...] += _swiglu_block(x_ref, wgu_ref, wd_ref, compute_dtype)

    @pl.when(j == pl.num_programs(1) - 1)
    def _():
        o_ref[...] = acc_ref[...].astype(o_ref.dtype)


# ---------------------------------------------------------------------------
# Host-side helpers
# ---------------------------------------------------------------------------

def prepare_llama_mlp_params(wg, wu, wd, compute_dtype=jnp.bfloat16):
    """One-time weight prep (call OUTSIDE jit, at parameter-load time).

    wg, wu: (I, H) torch nn.Linear layout.  wd: (H, I) torch layout.
    Returns:
      wgu : (2, H, I)  stacked, pre-transposed gate/up weights (compute dtype).
      wd_t: (I, H)     pre-transposed down weights             (compute dtype).
    bf16 compute is the default (recommended); pass jnp.float32 only for debugging.
    """
    wgu = jnp.stack([wg.T, wu.T], axis=0).astype(compute_dtype)
    return wgu, wd.T.astype(compute_dtype)


def _round_up(x, m):
    return ((x + m - 1) // m) * m


def _sublane(nbytes):
    return 8 if nbytes >= 4 else (16 if nbytes == 2 else 32)


def _vmem_capacity_bytes():
    try:
        return int(pltpu.get_tpu_info().vmem_capacity_bytes)
    except Exception:
        return 64 << 20  # conservative (v7x per-TensorCore) fallback


def _vmem_need(tm, ti, H, xb, cb, ob, use_scratch):
    """Estimated VMEM bytes for one pipelined step (incl. in-kernel temporaries)."""
    per_step = (tm * H * xb          # x tile
                + 2 * H * ti * cb    # stacked gate+up weight tile
                + ti * H * cb        # down weight tile
                + tm * H * ob)       # output tile
    need = 2 * per_step              # double-buffered pipeline copies
    if use_scratch:
        need += tm * H * 4           # f32 accumulator scratch
    need += tm * ti * (12 + cb)      # g, u, silu-product f32 temps + cast h
    return need


def _auto_tiles(M, H, I, xb, cb, ob, use_scratch, vmem_cap):
    """Pick (tm, ti) from the actual VMEM capacity (generation-aware)."""
    small_vmem = vmem_cap < (100 << 20)          # v7x: 64 MiB / TensorCore
    tm_cap = 512 if small_vmem else 1024         # v5e/v6e: 128 MiB VMEM -> big tm
    ti_cap = 512
    sub = _sublane(xb)
    budget = vmem_cap - (8 << 20)                # leave headroom for the compiler

    # intermediate tile: prefer an exact divisor (multiple of 128), else pad I
    if I <= ti_cap:
        ti = _round_up(I, 128)
    else:
        ti = (ti_cap // 128) * 128
        while ti > 128 and I % ti:
            ti -= 128
        if I % ti:
            ti = ti_cap                          # no divisor -> pad I up to ti

    # row tile: largest tm (<= cap) whose working set fits the VMEM budget
    const = 2 * (2 * H * ti * cb + ti * H * cb)                      # weight buffers
    per_tm = 2 * H * (xb + ob) + (4 * H if use_scratch else 0) + ti * (12 + cb)
    fit = max((budget - const) // per_tm, sub)
    tm = max(min(tm_cap, (fit // sub) * sub), sub)
    tm = min(tm, _round_up(M, sub))
    m_pad = _round_up(M, tm)

    # NOTE(v7x): with 2 TCs/chip the "parallel" row axis needs >=2 blocks to use
    # both cores; split the row tile when M permits.
    if small_vmem and m_pad // tm < 2:
        half = _round_up((m_pad + 1) // 2, sub)
        if sub <= half < tm:
            tm = half
    return tm, ti


@functools.partial(jax.jit, static_argnames=("tm", "ti"))
def llama_mlp(x, wgu, wd_t, *, tm=None, ti=None):
    """Fused SwiGLU MLP.

    x:    (B, S, H) activations (any float dtype; also the output dtype).
    wgu:  (2, H, I) stacked pre-transposed gate/up weights (compute dtype).
    wd_t: (I, H)    pre-transposed down weights            (compute dtype).
    tm/ti: optional static tile overrides (auto-picked per TPU generation if None).
    """
    B, S, H = x.shape
    two, Hw, I = wgu.shape
    assert two == 2 and Hw == H and wd_t.shape == (I, H)
    M = B * S

    compute_dtype = wgu.dtype
    out_dtype = x.dtype
    xb = jnp.dtype(x.dtype).itemsize
    cb = jnp.dtype(compute_dtype).itemsize
    ob = jnp.dtype(out_dtype).itemsize
    f32_out = out_dtype == jnp.float32
    use_scratch = not f32_out

    vmem_cap = _vmem_capacity_bytes()
    if tm is None or ti is None:
        a_tm, a_ti = _auto_tiles(M, H, I, xb, cb, ob, use_scratch, vmem_cap)
        tm = a_tm if tm is None else tm
        ti = a_ti if ti is None else ti

    # Pad instead of falling back to full-dimension blocks.
    M_pad = _round_up(M, tm)
    I_pad = _round_up(I, ti)

    x2 = x.reshape(M, H)
    if M_pad != M:
        x2 = jnp.pad(x2, ((0, M_pad - M), (0, 0)))
    if I_pad != I:
        # TODO(synk): pad the intermediate dim at prepare time to avoid the
        # per-call weight padding pass for non-multiple-of-128 checkpoints.
        wgu = jnp.pad(wgu, ((0, 0), (0, 0), (0, I_pad - I)))
        wd_t = jnp.pad(wd_t, ((0, I_pad - I), (0, 0)))

    kernel = functools.partial(
        _mlp_kernel_f32out if f32_out else _mlp_kernel_acc,
        compute_dtype=compute_dtype)
    scratch = [] if f32_out else [pltpu.VMEM((tm, H), jnp.float32)]

    grid = (M_pad // tm, I_pad // ti)

    need = _vmem_need(tm, ti, H, xb, cb, ob, use_scratch)
    vmem_limit = int(min(vmem_cap - (4 << 20),
                         max(need + (4 << 20), 32 << 20)))

    cost = pl.CostEstimate(
        flops=int(6 * M_pad * H * I_pad),
        transcendentals=int(M_pad * I_pad),
        bytes_accessed=int(M_pad * H * (xb + ob)
                           + grid[0] * 3 * H * I_pad * cb),
    )

    out = pl.pallas_call(
        kernel,
        out_shape=jax.ShapeDtypeStruct((M_pad, H), out_dtype),
        grid_spec=pltpu.PrefetchScalarGridSpec(
            num_scalar_prefetch=0,
            grid=grid,
            in_specs=[
                pl.BlockSpec((tm, H), lambda i, j: (i, 0)),        # x rows
                pl.BlockSpec((2, H, ti), lambda i, j: (0, 0, j)),  # gate+up cols
                pl.BlockSpec((ti, H), lambda i, j: (j, 0)),        # down rows
            ],
            out_specs=pl.BlockSpec((tm, H), lambda i, j: (i, 0)),
            scratch_shapes=scratch,
        ),
        compiler_params=pltpu.CompilerParams(
            dimension_semantics=("parallel", "arbitrary"),
            vmem_limit_bytes=vmem_limit,
        ),
        cost_estimate=cost,
    )(x2, wgu, wd_t)

    if M_pad != M:
        out = out[:M]
    return out.reshape(B, S, H)


# ---------------------------------------------------------------------------
# Reference + test
# ---------------------------------------------------------------------------

def _reference(x, wg, wu, wd):
    g = jnp.einsum("bsh,ih->bsi", x, wg)
    u = jnp.einsum("bsh,ih->bsi", x, wu)
    return jnp.einsum("bsi,hi->bsh", jax.nn.silu(g) * u, wd)


if __name__ == "__main__":
    # config: hidden_size=128, intermediate_size=256, hidden_act="silu",
    #         pretraining_tp=1
    batch, seq, hidden, intermediate = 2, 8, 128, 256

    key = jax.random.PRNGKey(0)
    kx, kg, ku, kd = jax.random.split(key, 4)

    x = jax.random.normal(kx, (batch, seq, hidden), dtype=jnp.float32)
    # nn.Linear(hidden, intermediate, bias=False).weight -> (intermediate, hidden)
    scale_h = 1.0 / (hidden ** 0.5)
    scale_i = 1.0 / (intermediate ** 0.5)
    wg = jax.random.uniform(kg, (intermediate, hidden), jnp.float32, -scale_h, scale_h)
    wu = jax.random.uniform(ku, (intermediate, hidden), jnp.float32, -scale_h, scale_h)
    # nn.Linear(intermediate, hidden, bias=False).weight -> (hidden, intermediate)
    wd = jax.random.uniform(kd, (hidden, intermediate), jnp.float32, -scale_i, scale_i)

    ref = _reference(x, wg, wu, wd)

    # --- f32-compute (debug) path ------------------------------------------
    wgu32, wd32 = prepare_llama_mlp_params(wg, wu, wd, compute_dtype=jnp.float32)
    out = jax.block_until_ready(llama_mlp(x, wgu32, wd32))
    assert out.shape == (batch, seq, hidden)
    assert jnp.allclose(out, ref, atol=1e-3, rtol=1e-3), "f32 mismatch vs reference"

    # --- bf16-compute (default, high-throughput) path, f32 activations ------
    wgu16, wd16 = prepare_llama_mlp_params(wg, wu, wd)   # bf16 compute by default
    out_bf = jax.block_until_ready(llama_mlp(x, wgu16, wd16))
    assert out_bf.shape == (batch, seq, hidden)
    assert jnp.allclose(out_bf, ref, atol=5e-2, rtol=5e-2), "bf16 mismatch vs reference"

    # --- bf16 activations / bf16 output (exercises the scratch-accumulator) -
    out_bb = jax.block_until_ready(llama_mlp(x.astype(jnp.bfloat16), wgu16, wd16))
    assert out_bb.dtype == jnp.bfloat16 and out_bb.shape == (batch, seq, hidden)
    assert jnp.allclose(out_bb.astype(jnp.float32), ref, atol=1e-1, rtol=1e-1), \
        "bf16-activation mismatch vs reference"

    print("KERNEL_OK")
</pallas_src>

<mosaic_0001>
module attributes {stable_mosaic.version = 11 : i64} {
  func.func @_mlp_kernel_f32out(%arg0: i32, %arg1: i32, %arg2: memref<8x128xf32, #tpu.memory_space<vmem>>, %arg3: memref<2x128x256xf32, #tpu.memory_space<vmem>>, %arg4: memref<256x128xf32, #tpu.memory_space<vmem>>, %arg5: memref<8x128xf32, #tpu.memory_space<vmem>>) attributes {dimension_semantics = [#tpu.dimension_semantics<parallel>, #tpu.dimension_semantics<arbitrary>], iteration_bounds = array<i64: 2, 1>, scalar_prefetch = 0 : i64, scratch_operands = 0 : i64, tpu.core_type = #tpu.core_type<tc>, window_params = [{transform_indices = @transform_0, window_bounds = array<i64: 8, 128>}, {transform_indices = @transform_1, window_bounds = array<i64: 2, 128, 256>}, {transform_indices = @transform_2, window_bounds = array<i64: 256, 128>}, {transform_indices = @transform_3, window_bounds = array<i64: 8, 128>}]} {
    %c0_i32 = arith.constant 0 : i32
    %0 = arith.cmpi eq, %arg1, %c0_i32 : i32
    %1 = arith.extui %0 : i1 to i32
    %c0_i32_0 = arith.constant 0 : i32
    %2 = arith.cmpi ne, %1, %c0_i32_0 : i32
    scf.if %2 {
      %cst_16 = arith.constant 0.000000e+00 : f32
      %22 = vector.broadcast %cst_16 : f32 to vector<8x128xf32>
      %c0_17 = arith.constant 0 : index
      %c0_18 = arith.constant 0 : index
      %23 = vector.load %arg5[%c0_17, %c0_18] : memref<8x128xf32, #tpu.memory_space<vmem>>, vector<8x128xf32>
      tpu.vector_store %arg5[%c0_17, %c0_18], %22 {strides = array<i32>} : memref<8x128xf32, #tpu.memory_space<vmem>>, vector<8x128xf32>,
    } else {
    }
    %c0 = arith.constant 0 : index
    %c0_1 = arith.constant 0 : index
    %3 = vector.load %arg5[%c0, %c0_1] : memref<8x128xf32, #tpu.memory_space<vmem>>, vector<8x128xf32>
    %c0_2 = arith.constant 0 : index
    %c0_3 = arith.constant 0 : index
    %4 = vector.load %arg2[%c0_2, %c0_3] : memref<8x128xf32, #tpu.memory_space<vmem>>, vector<8x128xf32>
    %c0_4 = arith.constant 0 : index
    %c0_5 = arith.constant 0 : index
    %c0_6 = arith.constant 0 : index
    %5 = vector.load %arg3[%c0_4, %c0_5, %c0_6] : memref<2x128x256xf32, #tpu.memory_space<vmem>>, vector<1x128x256xf32>
    %6 = vector.shape_cast %5 : vector<1x128x256xf32> to vector<128x256xf32>
    %cst = arith.constant dense<0.000000e+00> : vector<8x256xf32>
    %7 = tpu.matmul %4, %6, %cst {dimension_numbers = #tpu.dot_dimension_numbers<[1], [0], [0], [1], [0, 0, 1, 1], [], []>} : vector<8x128xf32>, vector<128x256xf32>, vector<8x256xf32> -> vector<8x256xf32>
    %c1 = arith.constant 1 : index
    %c0_7 = arith.constant 0 : index
    %c0_8 = arith.constant 0 : index
    %8 = vector.load %arg3[%c1, %c0_7, %c0_8] : memref<2x128x256xf32, #tpu.memory_space<vmem>>, vector<1x128x256xf32>
    %9 = vector.shape_cast %8 : vector<1x128x256xf32> to vector<128x256xf32>
    %cst_9 = arith.constant dense<0.000000e+00> : vector<8x256xf32>
    %10 = tpu.matmul %4, %9, %cst_9 {dimension_numbers = #tpu.dot_dimension_numbers<[1], [0], [0], [1], [0, 0, 1, 1], [], []>} : vector<8x128xf32>, vector<128x256xf32>, vector<8x256xf32> -> vector<8x256xf32>
    %11 = arith.negf %7 : vector<8x256xf32>
    %12 = math.exp %11 : vector<8x256xf32>
    %cst_10 = arith.constant 1.000000e+00 : f32
    %13 = vector.broadcast %cst_10 : f32 to vector<8x256xf32>
    %14 = arith.addf %13, %12 : vector<8x256xf32>
    %15 = arith.divf %13, %14 : vector<8x256xf32>
    %16 = arith.mulf %7, %15 : vector<8x256xf32>
    %17 = arith.mulf %16, %10 : vector<8x256xf32>
    %c0_11 = arith.constant 0 : index
    %c0_12 = arith.constant 0 : index
    %18 = vector.load %arg4[%c0_11, %c0_12] : memref<256x128xf32, #tpu.memory_space<vmem>>, vector<256x128xf32>
    %cst_13 = arith.constant dense<0.000000e+00> : vector<8x128xf32>
    %19 = tpu.matmul %17, %18, %cst_13 {dimension_numbers = #tpu.dot_dimension_numbers<[1], [0], [0], [1], [0, 0, 1, 1], [], []>} : vector<8x256xf32>, vector<256x128xf32>, vector<8x128xf32> -> vector<8x128xf32>
    %20 = arith.addf %3, %19 : vector<8x128xf32>
    %c0_14 = arith.constant 0 : index
    %c0_15 = arith.constant 0 : index
    %21 = vector.load %arg5[%c0_14, %c0_15] : memref<8x128xf32, #tpu.memory_space<vmem>>, vector<8x128xf32>
    tpu.vector_store %arg5[%c0_14, %c0_15], %20 {strides = array<i32>} : memref<8x128xf32, #tpu.memory_space<vmem>>, vector<8x128xf32>,
    return
  }
  func.func @transform_0(%arg0: i32, %arg1: i32) -> (i32, i32) {
    %c0_i32 = arith.constant 0 : i32
    %c0_i32_0 = arith.constant 0 : i32
    return %arg0, %c0_i32 : i32, i32
  }
  func.func @transform_1(%arg0: i32, %arg1: i32) -> (i32, i32, i32) {
    %c0_i32 = arith.constant 0 : i32
    %c0_i32_0 = arith.constant 0 : i32
    %c0_i32_1 = arith.constant 0 : i32
    return %c0_i32, %c0_i32_0, %arg1 : i32, i32, i32
  }
  func.func @transform_2(%arg0: i32, %arg1: i32) -> (i32, i32) {
    %c0_i32 = arith.constant 0 : i32
    %c0_i32_0 = arith.constant 0 : i32
    return %arg1, %c0_i32 : i32, i32
  }
  func.func @transform_3(%arg0: i32, %arg1: i32) -> (i32, i32) {
    %c0_i32 = arith.constant 0 : i32
    %c0_i32_0 = arith.constant 0 : i32
    return %arg0, %c0_i32 : i32, i32
  }
}

</mosaic_0001>

<bundles_post_ra>
// kernel: llama_mlp.1
= control target key start
LH: loop header
LB: loop body
LE: loop exit
PB: predicated region body
PF: predicated region fallthrough
CT: control target
= control target key end

     0   :  { %8 = vsyncpa [#allocation3], 0  ;;  %s1106_s0 = inlined_call_operand.hbm [shape: f32[16,128], index: 0, kind: input, shape index: {}]   ;;  %s1107_s1 = inlined_call_operand.hbm [shape: f32[2,128,256], index: 1, kind: input, shape index: {}]   ;;  %s1108_s2 = inlined_call_operand.hbm [shape: f32[256,128], index: 2, kind: input, shape index: {}]   ;;  %s1109_s3 = inlined_call_operand.hbm [shape: f32[16,128], index: 3, kind: output, shape index: {}]  }
   0x1   :  { %10 = vsyncpa [#allocation3 + $0x1], 0 }
   0x2   :  { %11 = vsyncpa [#allocation6], 0 }
   0x3   :  { %12 = vsyncpa [#allocation4], 0 }
   0x4   :  { %14 = vsyncpa [#allocation4 + $0x1], 0  ;;  %s955_s12 = smov 0   ;;  %s957_s13 = smov 0  }
   0x5   :  { %s959_s14 = smov 0   ;;  %s961_s15 = smov 0  }
   0x6   :  { %s963_s16 = smov 0   ;;  %s965_s17 = smov 0  }
   0x7 LB: > { %s636_s18 = sadd.s32 4294967295, %s927_s17   ;;  %p638_p0 = scmp.ge.s32.totalorder %s927_s17, 1  ;;  %s927_s17 = sphi %s965_s17, %s20_s17   ;;  %s923_s16 = sphi %s963_s16, %s1119_s16   ;;  %s919_s15 = sphi %s961_s15, %s1118_s15   ;;  %s915_s14 = sphi %s959_s14, %s1117_s14   ;;  %s911_s13 = sphi %s957_s13, %s1116_s13   ;;  %s907_s12 = sphi %s955_s12, %s1115_s12  }
   0x8   : > { %p989_p1 = scmp.eq.s32.totalorder %s636_s18, 0  ;;  %p141_p2 = scmp.lt.s32.totalorder %s927_s17, 3 }
   0x9   : > { %s155_s22 = sshll.u32 %s1107_s1, 4  ;;  %s929_s24 = smov [#allocation5]   ;;  %s156_s22 = int_to_ptr.hbm [resolvable:$true] %s155_s22 }
   0xa   : > { %p997_p3 = pnand %p638_p0, %p141_p2  ;;  %s157_s25 = sshll.u32 %s929_s24, 4  ;;  %s158_s25 = int_to_ptr.vmem [resolvable:$true] %s157_s25 }
   0xb   : > { %p641_p6 = scmp.ge.s32.totalorder %s927_s17, 2  ;;  %s172_s28 = sshll.u32 %s1108_s2, 4  ;;  %s173_s28 = int_to_ptr.hbm [resolvable:$true] %s172_s28 }
   0xc   : > { %p667_p4 = pneg %p997_p3  ;;  %s930_s29 = smov 256  }
   0xd   : > { %s931_s30 = smov 16   ;;  %s932_s4 = smov [#allocation7]  }
   0xe   : > { %p668_p5 = pnand %p667_p4, %p989_p1  ;;  %s174_s5 = sshll.u32 %s932_s4, 4  ;;  %s175_s5 = int_to_ptr.vmem [resolvable:$true] %s174_s5 }
   0xf   : > { %s933_s6 = smov 128   ;;  %s934_s7 = smov 8  }
  0x10   : > { %670 = dma.hbm_to_vmem [thread:$0]  (!%p668_p5), %s156_s22, 8192, %s158_s25, [#allocation6], %s930_s29, %s930_s29, %s931_s30  }
  0x11   : > { %673 = dma.hbm_to_vmem [thread:$0]  (!%p668_p5), %s173_s28, 4096, %s175_s5, [#allocation6], %s933_s6, %s933_s6, %s934_s7  }
  0x12   : > { %s32_s8 = sadd.s32 1, %s923_s16  ;;  %s637_s9 = sadd.s32 4294967294, %s927_s17  }
  0x13   : > { %p34_p7 = scmp.ge.s32.totalorder %s32_s8, 2  ;;  %s39_s10 = sadd.s32 1, %s915_s14 }
  0x14   : > { %p46_p8 = scmp.ne.s32.totalorder %s915_s14, %s911_s13  ;;  %p47_p9 = scmp.eq.s32.totalorder %s927_s17, 0 }
  0x15   : > { %s1121_s8 = smov (%p34_p7, %s32_s8), 0  ;;  %p52_p10 = scmp.ne.s32.totalorder %s911_s13, %s907_s12 }
  0x16   : > { %s36_s11 = ssub.s32 %s923_s16, %s1121_s8  ;;  %p128_p11 = scmp.eq.s32.totalorder %s636_s18, 1 }
  0x17   : > { %p37_p12 = scmp.eq.s32.totalorder %s36_s11, 0  ;;  %p1025_p13 = por %p989_p1, %p52_p10 }
  0x18   : > { %p1029_p0 = por %p128_p11, %p46_p8  ;;  %p134_p2 = scmp.eq.s32.totalorder %s637_s9, 1 }
  0x19   : > { %s1034_s22 = scalar_select %p37_p12, %s915_s14, %s39_s10  }
  0x1a   : > { %p48_p4 = por %p47_p9, %p46_p8  ;;  %p1036_p5 = por %p134_p2, %p52_p10 }
  0x1b   : > { %s188_s25 = sand.u32 1, %s915_s14   ;;  %s643_s18 = sshll.u32 %s923_s16, 3 }
  0x1c   : > { %p684_p7 = scmp.lt.s32.totalorder %s927_s17, 2  ;;  %s642_s26 = sshll.u32 %s188_s25, 3 }
  0x1d   : > { %s196_s29 = scalar_lea.hbm %s1106_s0, %s643_s18  ;;  %s192_s4 = scalar_lea.vmem [#allocation2], %s642_s26 }
  0x1e   : > { %s198_s30 = sshll.u32 %s196_s29, 4  ;;  %s200_s5 = sshll.u32 %s192_s4, 4  ;;  %s199_s30 = int_to_ptr.hbm [resolvable:$true] %s198_s30  ;;  %s201_s5 = int_to_ptr.vmem [resolvable:$true] %s200_s5 }
  0x1f   : > { %p675_p11 = pnand %p684_p7, %p48_p4  ;;  %s189_s6 = scalar_lea.sflag [#allocation3], %s188_s25 }
  0x20   : > { %209 = sbr.rel (%p997_p3) target bundleno = 362 (0x16a), region = 32  ;;  %s1049_s7 = sand.u32 (!%p997_p3), 1, %s911_s13  }
  0x21   : > { %677 = dma.hbm_to_vmem [thread:$0]  (!%p675_p11), %s199_s30, 128, %s201_s5, %s189_s6  }
  0x22   : > { %s645_s9 = sshll.u32 (!%p997_p3), %s1049_s7, 3  ;;  %s212_s10 = scalar_lea.sflag (!%p997_p3), [#allocation3], %s1049_s7 }
  0x23   : > { %s1055_s11 = scalar_lea.vmem (!%p997_p3), [#allocation2], %s645_s9 }
  0x25   : > { %894 = dma.done.wait (%p1025_p13), %s212_s10, 128  }
  0x26   : > { %896 = vsyncadd (%p1025_p13), %s212_s10, 4294967168 }
  0x27   : > { %898 = dma.done.wait (%p989_p1), [#allocation6], 12288  }
  0x28   : > { %900 = vsyncadd (%p989_p1), [#allocation6], 4294955008  ;;  %v288_v0 = vld [vmem:[#allocation5 + $0xf0] sm:$0xff]  ;;  %v289_v1 = vld [vmem:[#allocation5 + $0xf8] sm:$0xff]  ;;  %s652_s19 = sshll.u32 %s919_s15, 3  ;;  %s248_s18 = scalar_lea.vmem [#allocation8], %s645_s9 }
  0x29   : > { %v286_v2 = vld [vmem:[#allocation5 + $0xe0] sm:$0xff]  ;;  %290 = vmatpush.msra.mxu0 %v288_v0  ;;  %310 = vmatpush.msra.mxu1 %v289_v1  ;;  %v287_v3 = vld [vmem:[#allocation5 + $0xe8] sm:$0xff]  ;;  %v284_v4 = vld [vmem:[#allocation5 + $0xd0] sm:$0xff]  ;;  %s530_s25 = scalar_lea.hbm %s1109_s3, %s652_s19  ;;  %s532_s26 = sshll.u32 %s248_s18, 4  ;;  %s533_s26 = int_to_ptr.vmem [resolvable:$true] %s532_s26 }
  0x2a   : > { %v285_v5 = vld [vmem:[#allocation5 + $0xd8] sm:$0xff]  ;;  %v282_v6 = vld [vmem:[#allocation5 + $0xc0] sm:$0xff]  ;;  %v283_v7 = vld [vmem:[#allocation5 + $0xc8] sm:$0xff]  ;;  %s534_s27 = sshll.u32 %s530_s25, 4  ;;  %s520_s28 = scalar_lea.sflag [#allocation4], %s1049_s7  ;;  %s535_s27 = int_to_ptr.hbm [resolvable:$true] %s534_s27 }
  0x2b   : > { %291 = vmatpush.msra.mxu0 %v286_v2  ;;  %311 = vmatpush.msra.mxu1 %v287_v3  ;;  %v280_v8 = vld [vmem:[#allocation5 + $0xb0] sm:$0xff]  ;;  %v281_v9 = vld [vmem:[#allocation5 + $0xb8] sm:$0xff]  ;;  %v278_v10 = vld [vmem:[#allocation5 + $0xa0] sm:$0xff]  ;;  %s855_s29 = sshra.s32 %s535_s27, 4  ;;  %s861_s5 = scalar_lea.hbm %s1109_s3, 16  ;;  %s856_s29 = int_to_ptr.hbm [resolvable:$true] %s855_s29 }
  0x2c   : > { %v279_v11 = vld [vmem:[#allocation5 + $0xa8] sm:$0xff]  ;;  %v361_v12 = vld [vmem:[#allocation5 + $0x1f0] sm:$0xff]  ;;  %v362_v14 = vld [vmem:[#allocation5 + $0x1f8] sm:$0xff]  ;;  %s857_s30 = scalar_lea.hbm %s856_s29, 8  ;;  %p862_p9 = scmp.lt.s32.totalorder %s856_s29, %s1109_s3 }
  0x2d   : > { %292 = vmatpush.msra.mxu0 %v284_v4  ;;  %312 = vmatpush.msra.mxu1 %v285_v5  ;;  %v276_v13 = vld [vmem:[#allocation5 + $0x90] sm:$0xff]  ;;  %v277_v15 = vld [vmem:[#allocation5 + $0x98] sm:$0xff]  ;;  %v359_v16 = vld [vmem:[#allocation5 + $0x1e0] sm:$0xff]  ;;  %p858_p1 = scmp.ne.s32.totalorder %s856_s29, %s857_s30  ;;  %p863_p10 = scmp.lt.s32.totalorder %s861_s5, %s857_s30 }
  0x2e   : > { %363 = vmatpush.msra.mxu2 %v361_v12  ;;  %383 = vmatpush.msra.mxu3 %v362_v14  ;;  %v360_v17 = vld [vmem:[#allocation5 + $0x1e8] sm:$0xff]  ;;  %v357_v18 = vld [vmem:[#allocation5 + $0x1d0] sm:$0xff]  ;;  %v358_v19 = vld [vmem:[#allocation5 + $0x1d8] sm:$0xff] }
  0x2f   : > { %293 = vmatpush.msra.mxu0 %v282_v6  ;;  %313 = vmatpush.msra.mxu1 %v283_v7  ;;  %v274_v20 = vld [vmem:[#allocation5 + $0x80] sm:$0xff]  ;;  %v275_v21 = vld [vmem:[#allocation5 + $0x88] sm:$0xff]  ;;  %v272_v24 = vld [vmem:[#allocation5 + $0x70] sm:$0xff]  ;;  %p859_p3 = pnand %p858_p1, %p1029_p0  ;;  %p864_p12 = por %p863_p10, %p862_p9 }
  0x30   : > { %364 = vmatpush.msra.mxu2 %v359_v16  ;;  %384 = vmatpush.msra.mxu3 %v360_v17  ;;  %v355_v22 = vld [vmem:[#allocation5 + $0x1c0] sm:$0xff]  ;;  %v356_v23 = vld [vmem:[#allocation5 + $0x1c8] sm:$0xff]  ;;  %v273_v25 = vld [vmem:[#allocation5 + $0x78] sm:$0xff] }
  0x31   : > { %294 = vmatpush.msra.mxu0 %v280_v8  ;;  %314 = vmatpush.msra.mxu1 %v281_v9  ;;  %v353_v26 = vld [vmem:[#allocation5 + $0x1b0] sm:$0xff]  ;;  %v354_v27 = vld [vmem:[#allocation5 + $0x1b8] sm:$0xff]  ;;  %v270_v28 = vld [vmem:[#allocation5 + $0x60] sm:$0xff]  ;;  %p860_p8 = pneg %p859_p3 }
  0x32   : > { %365 = vmatpush.msra.mxu2 %v357_v18  ;;  %385 = vmatpush.msra.mxu3 %v358_v19  ;;  %v271_v29 = vld [vmem:[#allocation5 + $0x68] sm:$0xff]  ;;  %v351_v30 = vld [vmem:[#allocation5 + $0x1a0] sm:$0xff]  ;;  %v268_v32 = vld [vmem:[#allocation5 + $0x50] sm:$0xff] }
  0x33   : > { %295 = vmatpush.msra.mxu0 %v278_v10  ;;  %315 = vmatpush.msra.mxu1 %v279_v11  ;;  %v352_v31 = vld [vmem:[#allocation5 + $0x1a8] sm:$0xff]  ;;  %v269_v33 = vld [vmem:[#allocation5 + $0x58] sm:$0xff]  ;;  %v349_v34 = vld [vmem:[#allocation5 + $0x190] sm:$0xff]  ;;  %p865_p13 = pnand %p864_p12, %p860_p8 }
  0x34   : > { %366 = vmatpush.msra.mxu2 %v355_v22  ;;  %386 = vmatpush.msra.mxu3 %v356_v23  ;;  %v350_v35 = vld [vmem:[#allocation5 + $0x198] sm:$0xff]  ;;  %v266_v36 = vld [vmem:[#allocation5 + $0x40] sm:$0xff]  ;;  %v267_v37 = vld [vmem:[#allocation5 + $0x48] sm:$0xff] }
  0x35   : > { %296 = vmatpush.msra.mxu0 %v276_v13  ;;  %316 = vmatpush.msra.mxu1 %v277_v15  ;;  %v347_v38 = vld [vmem:[#allocation5 + $0x180] sm:$0xff]  ;;  %v348_v39 = vld [vmem:[#allocation5 + $0x188] sm:$0xff]  ;;  %v264_v40 = vld [vmem:[#allocation5 + $0x30] sm:$0xff] }
  0x36   : > { %367 = vmatpush.msra.mxu2 %v353_v26  ;;  %387 = vmatpush.msra.mxu3 %v354_v27  ;;  %v265_v41 = vld [vmem:[#allocation5 + $0x38] sm:$0xff]  ;;  %v345_v42 = vld [vmem:[#allocation5 + $0x170] sm:$0xff]  ;;  %v262_v44 = vld [vmem:[#allocation5 + $0x20] sm:$0xff] }
  0x37   : > { %297 = vmatpush.msra.mxu0 %v274_v20  ;;  %317 = vmatpush.msra.mxu1 %v275_v21  ;;  %v346_v43 = vld [vmem:[#allocation5 + $0x178] sm:$0xff]  ;;  %v263_v45 = vld [vmem:[#allocation5 + $0x28] sm:$0xff]  ;;  %v343_v46 = vld [vmem:[#allocation5 + $0x160] sm:$0xff] }
  0x38   : > { %368 = vmatpush.msra.mxu2 %v351_v30  ;;  %388 = vmatpush.msra.mxu3 %v352_v31  ;;  %v344_v47 = vld [vmem:[#allocation5 + $0x168] sm:$0xff]  ;;  %v260_v48 = vld [vmem:[#allocation5 + $0x10] sm:$0xff]  ;;  %v261_v49 = vld [vmem:[#allocation5 + $0x18] sm:$0xff] }
  0x39   : > { %298 = vmatpush.msra.mxu0 %v272_v24  ;;  %318 = vmatpush.msra.mxu1 %v273_v25  ;;  %v341_v50 = vld [vmem:[#allocation5 + $0x150] sm:$0xff]  ;;  %v342_v51 = vld [vmem:[#allocation5 + $0x158] sm:$0xff]  ;;  %v258_v52 = vld [vmem:[#allocation5] sm:$0xff] }
  0x3a   : > { %369 = vmatpush.msra.mxu2 %v349_v34  ;;  %389 = vmatpush.msra.mxu3 %v350_v35  ;;  %v259_v53 = vld [vmem:[#allocation5 + $0x8] sm:$0xff]  ;;  %v257_v54 = vld [vmem:[%s1055_s11] sm:$0xff]  ;;  %v339_v55 = vld [vmem:[#allocation5 + $0x140] sm:$0xff] }
  0x3b   : > { %299 = vmatpush.msra.mxu0 %v270_v28  ;;  %319 = vmatpush.msra.mxu1 %v271_v29  ;;  %v340_v56 = vld [vmem:[#allocation5 + $0x148] sm:$0xff]  ;;  %v337_v57 = vld [vmem:[#allocation5 + $0x130] sm:$0xff]  ;;  %v338_v58 = vld [vmem:[#allocation5 + $0x138] sm:$0xff] }
  0x3c   : > { %370 = vmatpush.msra.mxu2 %v347_v38  ;;  %390 = vmatpush.msra.mxu3 %v348_v39  ;;  %v335_v59 = vld [vmem:[#allocation5 + $0x120] sm:$0xff]  ;;  %v336_v60 = vld [vmem:[#allocation5 + $0x128] sm:$0xff]  ;;  %v333_v61 = vld [vmem:[#allocation5 + $0x110] sm:$0xff] }
  0x3d   : > { %300 = vmatpush.msra.mxu0 %v268_v32  ;;  %320 = vmatpush.msra.mxu1 %v269_v33  ;;  %v334_v62 = vld [vmem:[#allocation5 + $0x118] sm:$0xff]  ;;  %v331_v63 = vld [vmem:[#allocation5 + $0x100] sm:$0xff]  ;;  %v332_v0 = vld [vmem:[#allocation5 + $0x108] sm:$0xff] }
  0x3e   : > { %371 = vmatpush.msra.mxu2 %v345_v42  ;;  %391 = vmatpush.msra.mxu3 %v346_v43  ;;  %v460_v1 = vld [vmem:[#allocation7 + $0x78] sm:$0xff]  ;;  %v459_v3 = vld [vmem:[#allocation7 + $0x70] sm:$0xff]  ;;  %v458_v5 = vld [vmem:[#allocation7 + $0x68] sm:$0xff] }
  0x3f   : > { %301 = vmatpush.msra.mxu0 %v266_v36  ;;  %321 = vmatpush.msra.mxu1 %v267_v37  ;;  %v476_v2 = vld [vmem:[#allocation7 + $0xf8] sm:$0xff]  ;;  %v475_v4 = vld [vmem:[#allocation7 + $0xf0] sm:$0xff]  ;;  %v474_v6 = vld [vmem:[#allocation7 + $0xe8] sm:$0xff] }
  0x40   : > { %372 = vmatpush.msra.mxu2 %v343_v46  ;;  %392 = vmatpush.msra.mxu3 %v344_v47  ;;  %v457_v7 = vld [vmem:[#allocation7 + $0x60] sm:$0xff]  ;;  %v456_v9 = vld [vmem:[#allocation7 + $0x58] sm:$0xff]  ;;  %v455_v11 = vld [vmem:[#allocation7 + $0x50] sm:$0xff] }
  0x41   : > { %302 = vmatpush.msra.mxu0 %v264_v40  ;;  %322 = vmatpush.msra.mxu1 %v265_v41  ;;  %v473_v8 = vld [vmem:[#allocation7 + $0xe0] sm:$0xff]  ;;  %v472_v10 = vld [vmem:[#allocation7 + $0xd8] sm:$0xff]  ;;  %v471_v12 = vld [vmem:[#allocation7 + $0xd0] sm:$0xff] }
  0x42   : > { %373 = vmatpush.msra.mxu2 %v341_v50  ;;  %393 = vmatpush.msra.mxu3 %v342_v51  ;;  %v454_v13 = vld [vmem:[#allocation7 + $0x48] sm:$0xff]  ;;  %v453_v15 = vld [vmem:[#allocation7 + $0x40] sm:$0xff]  ;;  %v452_v17 = vld [vmem:[#allocation7 + $0x38] sm:$0xff] }
  0x43   : > { %303 = vmatpush.msra.mxu0 %v262_v44  ;;  %323 = vmatpush.msra.mxu1 %v263_v45  ;;  %v470_v14 = vld [vmem:[#allocation7 + $0xc8] sm:$0xff]  ;;  %v469_v16 = vld [vmem:[#allocation7 + $0xc0] sm:$0xff]  ;;  %v468_v18 = vld [vmem:[#allocation7 + $0xb8] sm:$0xff] }
  0x44   : > { %374 = vmatpush.msra.mxu2 %v339_v55  ;;  %394 = vmatpush.msra.mxu3 %v340_v56  ;;  %v451_v19 = vld [vmem:[#allocation7 + $0x30] sm:$0xff]  ;;  %v450_v21 = vld [vmem:[#allocation7 + $0x28] sm:$0xff]  ;;  %v449_v23 = vld [vmem:[#allocation7 + $0x20] sm:$0xff] }
  0x45   : > { %304 = vmatpush.msra.mxu0 %v260_v48  ;;  %324 = vmatpush.msra.mxu1 %v261_v49  ;;  %v467_v20 = vld [vmem:[#allocation7 + $0xb0] sm:$0xff]  ;;  %v466_v22 = vld [vmem:[#allocation7 + $0xa8] sm:$0xff]  ;;  %v465_v24 = vld [vmem:[#allocation7 + $0xa0] sm:$0xff] }
  0x46   : > { %375 = vmatpush.msra.mxu2 %v337_v57  ;;  %395 = vmatpush.msra.mxu3 %v338_v58  ;;  %v448_v25 = vld [vmem:[#allocation7 + $0x18] sm:$0xff]  ;;  %v447_v27 = vld [vmem:[#allocation7 + $0x10] sm:$0xff]  ;;  %v446_v29 = vld [vmem:[#allocation7 + $0x8] sm:$0xff] }
  0x47   : > { %305 = vmatpush.msra.mxu0 %v258_v52  ;;  %325 = vmatpush.msra.mxu1 %v259_v53  ;;  %v464_v26 = vld [vmem:[#allocation7 + $0x98] sm:$0xff]  ;;  %v463_v28 = vld [vmem:[#allocation7 + $0x90] sm:$0xff]  ;;  %v462_v30 = vld [vmem:[#allocation7 + $0x88] sm:$0xff] }
  0x48   : > { %306 = vmatmul.f32.vlgmr.msra.gmra.mxu0 %v257_v54  ;;  %326 = vmatmul.f32.vlgmr.msra.gmra.mxu1 %v257_v54  ;;  %v445_v33 = vld [vmem:[#allocation7] sm:$0xff] }
  0x49   : > { %376 = vmatpush.msra.mxu2 %v335_v59  ;;  %396 = vmatpush.msra.mxu3 %v336_v60  ;;  %v461_v34 = vld [vmem:[#allocation7 + $0x80] sm:$0xff] }
  0x4a   : > { %477 = vmatpush.msrb.mxu0 %v460_v1  ;;  %497 = vmatpush.msrb.mxu1 %v476_v2 }
  0x4b   : > { %377 = vmatpush.msra.mxu2 %v333_v61  ;;  %397 = vmatpush.msra.mxu3 %v334_v62 }
  0x4c   : > { %478 = vmatpush.msrb.mxu0 %v459_v3  ;;  %498 = vmatpush.msrb.mxu1 %v475_v4 }
  0x4d   : > { %378 = vmatpush.msra.mxu2 %v331_v63  ;;  %398 = vmatpush.msra.mxu3 %v332_v0 }
  0x4e   : > { %379 = vmatmul.f32.vlgmr.msra.gmra.mxu2 %v257_v54  ;;  %399 = vmatmul.f32.vlgmr.msra.gmra.mxu3 %v257_v54 }
  0x4f   : > { %479 = vmatpush.msrb.mxu0 %v458_v5  ;;  %499 = vmatpush.msrb.mxu1 %v474_v6 }
  0x51   : > { %480 = vmatpush.msrb.mxu0 %v457_v7  ;;  %500 = vmatpush.msrb.mxu1 %v473_v8 }
  0x53   : > { %481 = vmatpush.msrb.mxu0 %v456_v9  ;;  %501 = vmatpush.msrb.mxu1 %v472_v10 }
  0x55   : > { %482 = vmatpush.msrb.mxu0 %v455_v11  ;;  %502 = vmatpush.msrb.mxu1 %v471_v12 }
  0x57   : > { %483 = vmatpush.msrb.mxu0 %v454_v13  ;;  %503 = vmatpush.msrb.mxu1 %v470_v14 }
  0x59   : > { %484 = vmatpush.msrb.mxu0 %v453_v15  ;;  %504 = vmatpush.msrb.mxu1 %v469_v16 }
  0x5b   : > { %485 = vmatpush.msrb.mxu0 %v452_v17  ;;  %505 = vmatpush.msrb.mxu1 %v468_v18 }
  0x5d   : > { %486 = vmatpush.msrb.mxu0 %v451_v19  ;;  %506 = vmatpush.msrb.mxu1 %v467_v20 }
  0x5f   : > { %487 = vmatpush.msrb.mxu0 %v450_v21  ;;  %507 = vmatpush.msrb.mxu1 %v466_v22 }
  0x61   : > { %488 = vmatpush.msrb.mxu0 %v449_v23  ;;  %508 = vmatpush.msrb.mxu1 %v465_v24 }
  0x63   : > { %489 = vmatpush.msrb.mxu0 %v448_v25  ;;  %509 = vmatpush.msrb.mxu1 %v464_v26 }
  0x65   : > { %490 = vmatpush.msrb.mxu0 %v447_v27  ;;  %510 = vmatpush.msrb.mxu1 %v463_v28 }
  0x67   : > { %491 = vmatpush.msrb.mxu0 %v446_v29  ;;  %511 = vmatpush.msrb.mxu1 %v462_v30 }
  0x69   : > { %492 = vmatpush.msrb.mxu0 %v445_v33  ;;  %512 = vmatpush.msrb.mxu1 %v461_v34 }
  0xc5   : > { %v307_v31 = vpop.f32.mrf.mxu0  ;;  %v327_v32 = vpop.f32.mrf.mxu1 }
  0xc6   : > { %v649_v35 = vmul.f32 -1.442695, %v307_v31  ;;  %v650_v36 = vmul.f32 -1.442695, %v327_v32 }
  0xc8   : > { %743 = vpow2.f32 %v649_v35 }
  0xc9   : > { %745 = vpow2.f32 %v650_v36 }
  0xce   : > { %v744_v37 = vpop.eup %743 }
  0xcf   : > { %v746_v38 = vpop.eup %745  ;;  %v409_v39 = vadd.f32 1.0, %v744_v37 }
  0xd0   : > { %v410_v40 = vadd.f32 1.0, %v746_v38 }
  0xd1   : > { %747 = vrcp.f32 %v409_v39  ;;  %v422_v46 = vand.u32 2147483648, %v409_v39  ;;  %v420_v49 = vand.u32 2147483647, %v409_v39  ;;  %vm416_vm2 = vweird.f32 %v409_v39  ;;  %v380_v60 = vpop.f32.mrf.mxu2  ;;  %v400_v63 = vpop.f32.mrf.mxu3 }
  0xd2   : > { %749 = vrcp.f32 %v410_v40  ;;  %v437_v50 = vand.u32 2147483648, %v410_v40  ;;  %v435_v52 = vand.u32 2147483647, %v410_v40  ;;  %vm431_vm4 = vweird.f32 %v410_v40 }
  0xd3   : > { %v423_v54 = vor.u32 1.1754944e-38, %v422_v46  ;;  %vm421_vm5 = vcmp.eq.f32.partialorder %v420_v49, 8.507059e+37 }
  0xd4   : > { %v438_v57 = vor.u32 1.1754944e-38, %v437_v50  ;;  %vm436_vm7 = vcmp.eq.f32.partialorder %v435_v52, 8.507059e+37 }
  0xd7   : > { %v748_v41 = vpop.eup %747 }
  0xd8   : > { %v750_v42 = vpop.eup %749  ;;  %v412_v43 = vmul.f32 %v748_v41, %v409_v39  ;;  %vm417_vm0 = vweird.f32 %v748_v41 }
  0xd9   : > { %v427_v44 = vmul.f32 %v750_v42, %v410_v40  ;;  %vm432_vm1 = vweird.f32 %v750_v42  ;;  %vm418_vm3 = vmor %vm416_vm2, %vm417_vm0 }
  0xda   : > { %v413_v45 = vsub.f32 1.0, %v412_v43  ;;  %vm433_vm6 = vmor %vm431_vm4, %vm432_vm1 }
  0xdb   : > { %v428_v47 = vsub.f32 1.0, %v427_v44 }
  0xdc   : > { %v414_v48 = vmul.f32 %v748_v41, %v413_v45 }
  0xdd   : > { %v429_v51 = vmul.f32 %v750_v42, %v428_v47 }
  0xde   : > { %v415_v53 = vadd.f32 %v748_v41, %v414_v48 }
  0xdf   : > { %v430_v55 = vadd.f32 %v750_v42, %v429_v51 }
  0xe0   : > { %v419_v56 = vsel %vm418_vm3, %v748_v41, %v415_v53 }
  0xe1   : > { %v424_v58 = vsel %vm421_vm5, %v423_v54, %v419_v56  ;;  %v434_v59 = vsel %vm433_vm6, %v750_v42, %v430_v55 }
  0xe2   : > { %v441_v61 = vmul.f32 %v424_v58, %v307_v31  ;;  %v439_v62 = vsel %vm436_vm7, %v438_v57, %v434_v59 }
  0xe3   : > { %v442_v0 = vmul.f32 %v439_v62, %v327_v32 }
  0xe4   : > { %v443_v1 = vmul.f32 %v441_v61, %v380_v60 }
  0xe5   : > { %v444_v2 = vmul.f32 %v442_v0, %v400_v63 }
  0xe6   : > { %493 = vmatmul.f32.vlgmr.msrb.gmra.mxu0 %v443_v1 }
  0xe7   : > { %513 = vmatmul.f32.vlgmr.msrb.gmra.mxu1 %v444_v2 }
 0x163   : > { %v494_v3 = vpop.f32.mrf.mxu0 }
 0x164   : > { %v514_v4 = vpop.f32.mrf.mxu1 }
 0x165   : > { %v515_v5 = vadd.f32 %v514_v4, %v494_v3 }
 0x167   : > { %518 = vst [vmem:[%s248_s18] sm:$0xff] %v515_v5 }
 0x168   : > { %868 = shalt.err (!%p865_p13)
}
 0x169   : > { %665 = dma.vmem_to_hbm [thread:$0]  (%p1029_p0), %s533_s26, 128, %s535_s27, %s520_s28  }
 0x16a PF: > { %s546_s7 = sand.u32 1, %s907_s12   ;;  %p679_p2 = pnand %p641_p6, %p1036_p5 }
 0x16b   : > { %s547_s10 = scalar_lea.sflag [#allocation4], %s546_s7 }
 0x16c   : > { %p680_p4 = pneg %p679_p2 }
 0x16e   : > { %902 = dma.done.wait (%p680_p4), %s547_s10, 128  }
 0x16f   : > { %904 = vsyncadd (%p680_p4), %s547_s10, 4294967168  ;;  %s20_s17 = sadd.s32 1, %s927_s17   ;;  %s1115_s12 = smov %s911_s13 }
 0x170   : > { %p17_p7 = scmp.ge.s32.totalorder %s20_s17, 4   ;;  %s1116_s13 = smov %s915_s14 }
 0x171   : > { %s1117_s14 = smov %s1034_s22  ;;  %s1118_s15 = smov %s923_s16 }
 0x172   : > { %s1119_s16 = smov %s1121_s8  ;;  %19 = sbr.rel (!%p17_p7) target bundleno = 7 (0x7), region = 92 }
 0x177   :  { %553 = vsyncpa [#allocation3], 1 }
 0x178   :  { %555 = vsyncpa [#allocation3 + $0x1], 1 }
 0x179   :  { %556 = vsyncpa [#allocation6], 1 }
 0x17a   :  { %557 = vsyncpa [#allocation4], 1 }
 0x17b   :  { %559 = vsyncpa [#allocation4 + $0x1], 1 }

</bundles_post_ra>
